<compile_context>
chip_gen: v7x
topology: tpu7x:2x2x1
jax: 0.10.0
libtpu: 0.0.40
codegen_flags: <defaults>
</compile_context>

<pallas_src>
import jax
import jax.numpy as jnp
from jax import lax
from jax.experimental import pallas as pl
from jax.experimental.pallas import tpu as pltpu

# ----------------------------- config ---------------------------------------
B = 2          # batch
N_SITES = 12   # images.shape[1]; also num_embeddings of pos_embedding
H = W = 16     # spatial
NUM_FTRS = 512        # resnet18 fc.in_features
EMB_DIM = 12          # embedding_dim
BN_EPS = 1e-5


# ----------------------- ResNet18 backbone (plain JAX) ----------------------
# TODO(synk): the pretrained ResNet18 conv/BN stack is implemented in plain JAX
# (lax.conv) with deterministic random weights standing in for the pretrained
# checkpoint; it is not a Pallas kernel.  BatchNorms are folded into the conv
# weights/bias at init and the conv contractions run in bf16 (f32 accumulate).
def _he_conv(key, kh, kw, cin, cout):
    std = (2.0 / (kh * kw * cin)) ** 0.5
    return std * jax.random.normal(key, (kh, kw, cin, cout), jnp.float32)


def _bn_params(c):
    return dict(gamma=jnp.ones((c,), jnp.float32),
                beta=jnp.zeros((c,), jnp.float32),
                mean=jnp.zeros((c,), jnp.float32),
                var=jnp.ones((c,), jnp.float32))


def _fold_bn_into_conv(w, bn):
    # w' = w * gamma * rsqrt(var+eps), b' = beta - mean * gamma * rsqrt(var+eps)
    scale = bn["gamma"] * lax.rsqrt(bn["var"] + BN_EPS)           # [cout]
    w_f = (w * scale).astype(jnp.bfloat16)                        # bf16 MXU weights
    b_f = (bn["beta"] - bn["mean"] * scale).astype(jnp.float32)   # f32 bias
    return (w_f, b_f)


def init_resnet18(key):
    keys = iter(jax.random.split(key, 64))
    params = {"conv1": _fold_bn_into_conv(_he_conv(next(keys), 7, 7, 3, 64),
                                          _bn_params(64))}
    layer_defs = [(64, 64, 1), (64, 128, 2), (128, 256, 2), (256, 512, 2)]
    layers = []
    for cin, cout, stride in layer_defs:
        blocks = []
        for bi in range(2):
            s = stride if bi == 0 else 1
            ci = cin if bi == 0 else cout
            blk = dict(
                stride=s,
                conv1=_fold_bn_into_conv(_he_conv(next(keys), 3, 3, ci, cout),
                                         _bn_params(cout)),
                conv2=_fold_bn_into_conv(_he_conv(next(keys), 3, 3, cout, cout),
                                         _bn_params(cout)))
            if s != 1 or ci != cout:
                blk["down"] = _fold_bn_into_conv(_he_conv(next(keys), 1, 1, ci, cout),
                                                 _bn_params(cout))
            blocks.append(blk)
        layers.append(blocks)
    params["layers"] = layers
    return params


def _conv_b(x, wb, stride, pad):
    w, b = wb
    y = lax.conv_general_dilated(
        x.astype(jnp.bfloat16), w, (stride, stride), pad,
        dimension_numbers=("NHWC", "HWIO", "NHWC"),
        preferred_element_type=jnp.float32)        # bf16 MXU, f32 accumulation
    return y + b                                   # folded-BN bias, f32 elementwise


def _basic_block(x, blk):
    s = blk["stride"]
    y = jax.nn.relu(_conv_b(x, blk["conv1"], s, ((1, 1), (1, 1))))
    y = _conv_b(y, blk["conv2"], 1, ((1, 1), (1, 1)))
    sc = _conv_b(x, blk["down"], s, ((0, 0), (0, 0))) if "down" in blk else x
    return jax.nn.relu(y + sc)


def resnet18_prefinal(x_nhwc, params):
    """Runs everything except the last block's residual add + ReLU + avgpool.

    Returns (main_branch, shortcut) of the final layer4 block; the epilogue
    (add, ReLU, spatial mean) is fused into the Pallas head kernel.
    """
    y = jax.nn.relu(_conv_b(x_nhwc, params["conv1"], 2, ((3, 3), (3, 3))))
    y = lax.reduce_window(y, -jnp.inf, lax.max,
                          (1, 3, 3, 1), (1, 2, 2, 1),
                          ((0, 0), (1, 1), (1, 1), (0, 0)))
    blocks = [blk for layer in params["layers"] for blk in layer]
    for blk in blocks[:-1]:
        y = _basic_block(y, blk)
    last = blocks[-1]                               # layer4 block 1: stride 1, identity shortcut
    main = jax.nn.relu(_conv_b(y, last["conv1"], 1, ((1, 1), (1, 1))))
    main = _conv_b(main, last["conv2"], 1, ((1, 1), (1, 1)))
    return main, y                                  # [BN, h, w, 512] each, f32


# ------------------------- Pallas head kernel -------------------------------
def head_kernel(main_ref, sc_ref, wrow_ref, poolT_ref, bias_ref, o_ref):
    # main_ref : [R, F]   last-block main branch, rows = (batch*site*spatial)
    # sc_ref   : [R, F]   last-block shortcut
    # wrow_ref : [1, F]   fc3 feature-weight row (broadcast over rows)
    # poolT_ref: [R, B]   mask / (N_SITES*h*w) pooling matrix (avgpool + masked mean)
    # bias_ref : [1, B]   fc3 bias + per-batch embedding-path contribution
    # o_ref    : [1, B]   lane-dense sigmoid output
    #
    # All work stays on VPU/XLU/EUP: residual add + ReLU (VPU), broadcast-mul +
    # lane reduce (VPU+XLU), broadcast-mul + sublane reduce (VPU+XLU), exp (EUP).
    z = jnp.maximum(main_ref[...] + sc_ref[...], 0.0)                 # fused residual + ReLU
    r = jnp.sum(z * wrow_ref[...], axis=-1, keepdims=True)            # [R, 1] per-row logit
    logit = jnp.sum(poolT_ref[...] * r, axis=0, keepdims=True)        # [1, B] pooled
    logit = logit + bias_ref[...]
    o_ref[...] = 1.0 / (1.0 + jnp.exp(-logit))


def head_pallas(main2d, sc2d, wrow, poolT, bias_row):
    R, F = main2d.shape
    Bt = poolT.shape[1]
    vmem = pl.BlockSpec(memory_space=pltpu.MemorySpace.VMEM)
    cost = pl.CostEstimate(
        flops=4 * R * F + 2 * R * Bt,
        transcendentals=Bt,
        bytes_accessed=4 * (2 * R * F + F + R * Bt + 2 * Bt))
    # Gridless: total resident data is ~100 KB, far under VMEM on every chip
    # (incl. v7x's 64 MiB).  Add a row-tiled "parallel" grid only if B*N grows.
    return pl.pallas_call(
        head_kernel,
        out_shape=jax.ShapeDtypeStruct((1, Bt), jnp.float32),
        in_specs=[vmem, vmem, vmem, vmem, vmem],
        out_specs=vmem,
        cost_estimate=cost,
    )(main2d, sc2d, wrow, poolT, bias_row)


# ------------------------------ full model ----------------------------------
def make_net_forward(resnet_params, emb_table, fc3_w, fc3_b):
    # fc3 input ordering per the PyTorch Net: torch.cat([features, embedding])
    wrow = fc3_w[:, :NUM_FTRS]                           # [1, F] feature weights
    we = fc3_w[:, NUM_FTRS:].T                           # [E, 1] embedding weights
    # Embedding path is linear -> collapses to one scalar per site id.
    s_contrib = (emb_table @ we).reshape(-1)             # [num_embeddings]
    bias0 = fc3_b.reshape(()).astype(jnp.float32)

    @jax.jit
    def forward(images, sites, masks):
        # images: [B, N, 3, H, W] (NCHW per site, like PyTorch)
        x = images.reshape(B * N_SITES, 3, H, W)
        x = jnp.transpose(x, (0, 2, 3, 1))                              # -> NHWC
        main, sc = resnet18_prefinal(x, resnet_params)                  # [BN, h, w, 512] f32
        bn, h, w, f = main.shape
        hw = h * w
        main2d = main.reshape(bn * hw, f)
        sc2d = sc.reshape(bn * hw, f)

        # mask semantics match the PyTorch mean(mask*x): divide by N_SITES, not mask count
        maskf = (masks == 1).astype(jnp.float32).reshape(B * N_SITES)   # [B*N]

        # Fold embedding contribution + fc3 bias into a per-batch bias row [1, B].
        radd = jnp.take(s_contrib, sites.reshape(-1))                   # [B*N]
        emb_part = (maskf * radd).reshape(B, N_SITES).sum(axis=-1) / float(N_SITES)
        bias_row = (bias0 + emb_part).reshape(1, B)

        # Fold mask + mean-over-sites + spatial avgpool into one pooling matrix [R, B].
        rows_b = jnp.repeat(jnp.arange(B), N_SITES * hw)
        mask_rows = jnp.repeat(maskf, hw)
        poolT = (jax.nn.one_hot(rows_b, B, dtype=jnp.float32)
                 * mask_rows[:, None]) / float(N_SITES * hw)

        out_row = head_pallas(main2d, sc2d, wrow, poolT, bias_row)      # [1, B] lane-dense
        return out_row.T                                                # [B, 1] like the Net

    return forward


if __name__ == "__main__":
    root = jax.random.PRNGKey(0)
    k_img, k_site, k_mask, k_res, k_emb, k_w, k_b = jax.random.split(root, 7)

    # deterministic parameters
    resnet_params = init_resnet18(k_res)
    emb_table = 0.1 * jax.random.normal(k_emb, (N_SITES, EMB_DIM), jnp.float32)
    fc3_w = 0.05 * jax.random.normal(k_w, (1, NUM_FTRS + EMB_DIM), jnp.float32)
    fc3_b = 0.05 * jax.random.normal(k_b, (1,), jnp.float32)

    # deterministic inputs
    images = jax.random.normal(k_img, (B, N_SITES, 3, H, W), jnp.float32)
    sites = jax.random.randint(k_site, (B, N_SITES), 0, N_SITES, jnp.int32)
    masks = jax.random.randint(k_mask, (B, N_SITES), 0, 2, jnp.int32)

    forward = make_net_forward(resnet_params, emb_table, fc3_w, fc3_b)
    out = forward(images, sites, masks)
    jax.block_until_ready(out)
    assert out.shape == (B, 1) and out.dtype == jnp.float32
    print("KERNEL_OK")
</pallas_src>

<mosaic_0001>
module attributes {stable_mosaic.version = 11 : i64} {
  func.func @head_kernel(%arg0: memref<24x512xf32, #tpu.memory_space<vmem>>, %arg1: memref<24x512xf32, #tpu.memory_space<vmem>>, %arg2: memref<1x512xf32, #tpu.memory_space<vmem>>, %arg3: memref<24x2xf32, #tpu.memory_space<vmem>>, %arg4: memref<1x2xf32, #tpu.memory_space<vmem>>, %arg5: memref<1x2xf32, #tpu.memory_space<vmem>>) attributes {dimension_semantics = [], scalar_prefetch = 0 : i64, scratch_operands = 0 : i64, tpu.core_type = #tpu.core_type<tc>} {
    %c0 = arith.constant 0 : index
    %c0_0 = arith.constant 0 : index
    %0 = vector.load %arg0[%c0, %c0_0] : memref<24x512xf32, #tpu.memory_space<vmem>>, vector<24x512xf32>
    %c0_1 = arith.constant 0 : index
    %c0_2 = arith.constant 0 : index
    %1 = vector.load %arg1[%c0_1, %c0_2] : memref<24x512xf32, #tpu.memory_space<vmem>>, vector<24x512xf32>
    %2 = arith.addf %0, %1 : vector<24x512xf32>
    %cst = arith.constant 0.000000e+00 : f32
    %3 = vector.broadcast %cst : f32 to vector<24x512xf32>
    %4 = arith.maximumf %2, %3 : vector<24x512xf32>
    %c0_3 = arith.constant 0 : index
    %c0_4 = arith.constant 0 : index
    %5 = vector.load %arg2[%c0_3, %c0_4] : memref<1x512xf32, #tpu.memory_space<vmem>>, vector<1x512xf32>
    %6 = vector.broadcast %5 : vector<1x512xf32> to vector<24x512xf32>
    %7 = arith.mulf %4, %6 : vector<24x512xf32>
    %cst_5 = arith.constant dense<0.000000e+00> : vector<24xf32>
    %8 = vector.multi_reduction <add>, %7, %cst_5 [1] : vector<24x512xf32> to vector<24xf32>
    %9 = vector.shape_cast %8 : vector<24xf32> to vector<24x1xf32>
    %c0_6 = arith.constant 0 : index
    %c0_7 = arith.constant 0 : index
    %10 = vector.load %arg3[%c0_6, %c0_7] : memref<24x2xf32, #tpu.memory_space<vmem>>, vector<24x2xf32>
    %11 = vector.broadcast %9 : vector<24x1xf32> to vector<24x2xf32>
    %12 = arith.mulf %10, %11 : vector<24x2xf32>
    %cst_8 = arith.constant dense<0.000000e+00> : vector<2xf32>
    %13 = vector.multi_reduction <add>, %12, %cst_8 [0] : vector<24x2xf32> to vector<2xf32>
    %14 = vector.shape_cast %13 : vector<2xf32> to vector<1x2xf32>
    %c0_9 = arith.constant 0 : index
    %c0_10 = arith.constant 0 : index
    %15 = vector.load %arg4[%c0_9, %c0_10] : memref<1x2xf32, #tpu.memory_space<vmem>>, vector<1x2xf32>
    %16 = arith.addf %14, %15 : vector<1x2xf32>
    %cst_11 = arith.constant 0.000000e+00 : f32
    %17 = vector.broadcast %cst_11 : f32 to vector<1x2xf32>
    %18 = arith.subf %17, %16 : vector<1x2xf32>
    %19 = math.exp %18 : vector<1x2xf32>
    %cst_12 = arith.constant 1.000000e+00 : f32
    %20 = vector.broadcast %cst_12 : f32 to vector<1x2xf32>
    %21 = arith.addf %20, %19 : vector<1x2xf32>
    %cst_13 = arith.constant 1.000000e+00 : f32
    %22 = vector.broadcast %cst_13 : f32 to vector<1x2xf32>
    %23 = arith.divf %22, %21 : vector<1x2xf32>
    %c0_14 = arith.constant 0 : index
    %c0_15 = arith.constant 0 : index
    %24 = vector.load %arg5[%c0_14, %c0_15] : memref<1x2xf32, #tpu.memory_space<vmem>>, vector<1x2xf32>
    tpu.vector_store %arg5[%c0_14, %c0_15], %23 {strides = array<i32>} : memref<1x2xf32, #tpu.memory_space<vmem>>, vector<1x2xf32>,
    return
  }
}

</mosaic_0001>

<bundles_post_ra>
// kernel: eq.1
= control target key start
LH: loop header
LB: loop body
LE: loop exit
PB: predicated region body
PF: predicated region fallthrough
CT: control target
= control target key end

     0   :  { %vm7_vm0 = vcmask 97280   ;;  %vm13_vm1 = vcmask 195680   ;;  %s39_s0 = inlined_call_operand.vmem [shape: s32[2,12], index: 0, kind: input, shape index: {}]   ;;  %s40_s1 = inlined_call_operand.vmem [shape: s32[24], index: 1, kind: output, shape index: {}]  }
   0x1   :  { %v4_v0 = vld [vmem:[%s39_s0] sm:$0x3]  ;;  %s22_s0 = smov 12  }
   0x2   :  { %5 = vst [vmem:[#allocation1] sm:$0x3] %v4_v0 }
   0x9   :  { %v10_v1 = vld [vmem:[#allocation1 + $0x1] sm:$0x1]   ;;  %v6_v2 = vld [vmem:[#allocation1] sm:$0x1]  }
   0xa   :  { %11 = vrot.lane.b32.xlu0 %v10_v1, %s22_s0  ;;  %8 = vst.msk [vmem:[#allocation0] sm:$0x1] %vm7_vm0, %v6_v2  }
  0x7c   :  { %v12_v3 = vpop.permute.xlu0 %11  }
  0x7d   :  { %14 = vst.msk [vmem:[#allocation0] sm:$0x1] %vm13_vm1, %v12_v3  }
  0x84   :  { %v18_v4 = vld [vmem:[#allocation0] sm:$0x1] }
  0x85   :  { %20 = vst [vmem:[%s40_s1] sm:$0x1] %v18_v4 }

// kernel: forward.1
= control target key start
LH: loop header
LB: loop body
LE: loop exit
PB: predicated region body
PF: predicated region fallthrough
CT: control target
= control target key end

     0   :  { %v71_v3 = vlaneseq  ;;  %s319_s0 = inlined_call_operand.vmem [shape: f32[24,512], index: 0, kind: input, shape index: {}]   ;;  %s320_s1 = inlined_call_operand.vmem [shape: f32[24,512], index: 1, kind: input, shape index: {}]   ;;  %s321_s2 = inlined_call_operand.vmem [shape: f32[1,512], index: 2, kind: input, shape index: {}]   ;;  %s322_s3 = inlined_call_operand.vmem [shape: f32[24,2], index: 3, kind: input, shape index: {}]   ;;  %s323_s4 = inlined_call_operand.vmem [shape: f32[1,2], index: 4, kind: input, shape index: {}]   ;;  %s324_s5 = inlined_call_operand.hbm [shape: f32[1,2], index: 5, kind: output, shape index: {}]  }
   0x1   :  { %v21_v0 = vld [vmem:[%s319_s0] sm:$0xff]  ;;  %v22_v1 = vld [vmem:[%s319_s0 + $0x8] sm:$0xff]  ;;  %v23_v2 = vld [vmem:[%s319_s0 + $0x10] sm:$0xff] }
   0x2   :  { %v24_v4 = vld [vmem:[%s319_s0 + $0x18] sm:$0xff]  ;;  %v33_v5 = vld [vmem:[%s320_s1] sm:$0xff]  ;;  %v34_v6 = vld [vmem:[%s320_s1 + $0x8] sm:$0xff]  ;;  %v72_v12 = vshrl.u32 %v71_v3, 7 }
   0x3   :  { %v35_v7 = vld [vmem:[%s320_s1 + $0x10] sm:$0xff]  ;;  %v36_v8 = vld [vmem:[%s320_s1 + $0x18] sm:$0xff]  ;;  %v45_v9 = vadd.f32 %v33_v5, %v21_v0  ;;  %v46_v10 = vadd.f32 %v34_v6, %v22_v1  ;;  %v69_v11 = vld [vmem:[%s321_s2] sm:$0xf] }
   0x4   :  { %v47_v13 = vadd.f32 %v35_v7, %v23_v2  ;;  %v48_v14 = vadd.f32 %v36_v8, %v24_v4  ;;  %v25_v15 = vld [vmem:[%s319_s0 + $0x20] sm:$0xff]  ;;  %v26_v16 = vld [vmem:[%s319_s0 + $0x28] sm:$0xff]  ;;  %v27_v17 = vld [vmem:[%s319_s0 + $0x30] sm:$0xff]  ;;  %v73_v20 = vsub.s32 0, %v72_v12  ;;  %v77_v21 = vsub.s32 1, %v72_v12 }
   0x5   :  { %v57_v18 = vmax.f32 %v45_v9, 0.0  ;;  %v58_v19 = vmax.f32 %v46_v10, 0.0  ;;  %v28_v22 = vld [vmem:[%s319_s0 + $0x38] sm:$0xff]  ;;  %v37_v23 = vld [vmem:[%s320_s1 + $0x20] sm:$0xff]  ;;  %v81_v26 = vsub.s32 2, %v72_v12  ;;  %v85_v27 = vsub.s32 3, %v72_v12 }
   0x6   :  { %v59_v24 = vmax.f32 %v47_v13, 0.0  ;;  %v60_v25 = vmax.f32 %v48_v14, 0.0  ;;  %v38_v28 = vld [vmem:[%s320_s1 + $0x28] sm:$0xff]  ;;  %v39_v29 = vld [vmem:[%s320_s1 + $0x30] sm:$0xff]  ;;  %v74_v30 = vrot.slane %v69_v11, %v73_v20  ;;  %v78_v31 = vrot.slane %v69_v11, %v77_v21  ;;  %v40_v32 = vld [vmem:[%s320_s1 + $0x38] sm:$0xff] }
   0x7   :  { %v49_v33 = vadd.f32 %v37_v23, %v25_v15  ;;  %v50_v34 = vadd.f32 %v38_v28, %v26_v16  ;;  %v82_v35 = vrot.slane %v69_v11, %v81_v26  ;;  %v86_v36 = vrot.slane %v69_v11, %v85_v27  ;;  %v29_v39 = vld [vmem:[%s319_s0 + $0x40] sm:$0xff]  ;;  %v30_v40 = vld [vmem:[%s319_s0 + $0x48] sm:$0xff]  ;;  %v31_v46 = vld [vmem:[%s319_s0 + $0x50] sm:$0xff] }
   0x8   :  { %v51_v37 = vadd.f32 %v39_v29, %v27_v17  ;;  %v52_v38 = vadd.f32 %v40_v32, %v28_v22  ;;  %v41_v41 = vld [vmem:[%s320_s1 + $0x40] sm:$0xff]  ;;  %v91_v42 = vmul.f32 %v74_v30, %v57_v18  ;;  %v92_v43 = vmul.f32 %v78_v31, %v58_v19  ;;  %v42_v47 = vld [vmem:[%s320_s1 + $0x48] sm:$0xff]  ;;  %v43_v48 = vld [vmem:[%s320_s1 + $0x50] sm:$0xff] }
   0x9   :  { %v61_v44 = vmax.f32 %v49_v33, 0.0  ;;  %v62_v45 = vmax.f32 %v50_v34, 0.0  ;;  %v93_v49 = vmul.f32 %v82_v35, %v59_v24  ;;  %v94_v50 = vmul.f32 %v86_v36, %v60_v25  ;;  %v32_v53 = vld [vmem:[%s319_s0 + $0x58] sm:$0xff] }
   0xa   :  { %v63_v51 = vmax.f32 %v51_v37, 0.0  ;;  %v64_v52 = vmax.f32 %v52_v38, 0.0  ;;  %v44_v54 = vld [vmem:[%s320_s1 + $0x58] sm:$0xff] }
   0xb   :  { %10 = vsyncpa [#allocation3], 0  ;;  %v103_v55 = vadd.f32 %v92_v43, %v91_v42  ;;  %v95_v56 = vmul.f32 %v74_v30, %v61_v44  ;;  %v96_v57 = vmul.f32 %v78_v31, %v62_v45  ;;  %v53_v58 = vadd.f32 %v41_v41, %v29_v39  ;;  %v118_v16 = vld [vmem:[%s322_s3] sm:$0xff]  ;;  %v119_v18 = vld [vmem:[%s322_s3 + $0x8] sm:$0xff] }
   0xc   :  { %v97_v59 = vmul.f32 %v82_v35, %v63_v51  ;;  %v98_v60 = vmul.f32 %v86_v36, %v64_v52  ;;  %v54_v61 = vadd.f32 %v42_v47, %v30_v40  ;;  %v55_v62 = vadd.f32 %v43_v48, %v31_v46  ;;  %v120_v22 = vld [vmem:[%s322_s3 + $0x10] sm:$0xff]  ;;  %s189_s3 = smov [#allocation2]  }
   0xd   :  { %v104_v63 = vadd.f32 %v103_v55, %v93_v49  ;;  %v108_v0 = vadd.f32 %v96_v57, %v95_v56  ;;  %v56_v1 = vadd.f32 %v44_v54, %v32_v53  ;;  %v65_v2 = vmax.f32 %v53_v58, 0.0  ;;  %s152_s22 = sshll.u32 %s189_s3, 4  ;;  %s153_s22 = int_to_ptr.vmem [resolvable:$true] %s152_s22 }
   0xe   :  { %v66_v3 = vmax.f32 %v54_v61, 0.0  ;;  %v67_v4 = vmax.f32 %v55_v62, 0.0  ;;  %vm124_vm0 = vcmask 15360   ;;  %vm144_vm1 = vcmask 8192   ;;  %s165_s23 = scalar_lea.vmem %s153_s22, 16  ;;  %s169_s24 = scalar_lea.vmem %s153_s22, 32 }
   0xf   :  { %v105_v5 = vadd.f32 %v104_v63, %v94_v50  ;;  %v109_v6 = vadd.f32 %v108_v0, %v97_v59  ;;  %v68_v7 = vmax.f32 %v56_v1, 0.0  ;;  %v99_v8 = vmul.f32 %v74_v30, %v65_v2  ;;  %p166_p0 = scmp.ne.s32.totalorder %s153_s22, %s165_s23  ;;  %p170_p1 = scmp.lt.s32.totalorder %s153_s22, %s153_s22 }
  0x10   :  { %v100_v9 = vmul.f32 %v78_v31, %v66_v3  ;;  %v101_v10 = vmul.f32 %v82_v35, %v67_v4  ;;  %v136_v35 = vld [vmem:[%s323_s4] sm:$0x1]  ;;  %p171_p2 = scmp.lt.s32.totalorder %s169_s24, %s165_s23 }
  0x11   :  { %106 = vadd.xlane.f32.xlu0 %v105_v5  ;;  %v110_v11 = vadd.f32 %v109_v6, %v98_v60  ;;  %v102_v12 = vmul.f32 %v86_v36, %v68_v7 }
  0x12   :  { %v113_v13 = vadd.f32 %v100_v9, %v99_v8  ;;  %p172_p3 = por %p171_p2, %p170_p1 }
  0x14   :  { %v114_v14 = vadd.f32 %v113_v13, %v101_v10  ;;  %p173_p4 = pnand %p172_p3, %p166_p0 }
  0x15   :  { %111 = vadd.xlane.f32.xlu0 %v110_v11 }
  0x16   :  { %v115_v15 = vadd.f32 %v114_v14, %v102_v12 }
  0x18   :  { %116 = vadd.xlane.f32.xlu1 %v115_v15 }
  0x9e   :  { %v107_v17 = vpop.xlane.xlu0 %106 }
  0x9f   :  { %v121_v19 = vmul.f32 %v118_v16, %v107_v17 }
  0xa1   :  { %v125_v23 = vsel %vm124_vm0, %v121_v19, 0.0 }
  0xa2   :  { %v112_v20 = vpop.xlane.xlu0 %111 }
  0xa3   :  { %v122_v21 = vmul.f32 %v119_v18, %v112_v20 }
  0xa5   :  { %v126_v24 = vsel %vm124_vm0, %v122_v21, 0.0  ;;  %v117_v25 = vpop.xlane.xlu1 %116 }
  0xa6   :  { %v127_v26 = vadd.f32 %v126_v24, %v125_v23  ;;  %v123_v27 = vmul.f32 %v120_v22, %v117_v25 }
  0xa8   :  { %v128_v28 = vsel %vm124_vm0, %v123_v27, 0.0 }
  0xa9   :  { %v129_v29 = vadd.f32 %v128_v28, %v127_v26 }
  0xab   :  { %v130_v30 = vrot.slane %v129_v29, 4 }
  0xad   :  { %v131_v31 = vadd.f32 %v130_v30, %v129_v29 }
  0xaf   :  { %v132_v32 = vrot.slane %v131_v31, 2 }
  0xb1   :  { %v133_v33 = vadd.f32 %v132_v32, %v131_v31 }
  0xb3   :  { %v134_v34 = vrot.slane %v133_v33, 1 }
  0xb5   :  { %v135_v36 = vadd.f32 %v134_v34, %v133_v33 }
  0xb7   :  { %v137_v37 = vadd.f32 %v136_v35, %v135_v36 }
  0xb9   :  { %v138_v38 = vsub.f32 0.0, %v137_v37 }
  0xbb   :  { %v139_v39 = vmul.f32 1.442695, %v138_v38 }
  0xbd   :  { %161 = vpow2.f32 %v139_v39 }
  0xc7   :  { %v162_v40 = vpop.eup %161 }
  0xc8   :  { %v141_v41 = vadd.f32 1.0, %v162_v40 }
  0xca   :  { %163 = vrcp.f32 %v141_v41 }
  0xd4   :  { %v164_v42 = vpop.eup %163 }
  0xd5   :  { %145 = vst.msk [vmem:[#allocation2] sm:$0x1] %vm144_vm1, %v164_v42 }
  0xd6   :  { %176 = shalt.err (!%p173_p4)
}
  0xd7   :  { %s177_s26 = scalar_lea.hbm %s324_s5, 16 }
  0xd8   :  { %p178_p5 = scmp.ne.s32.totalorder %s324_s5, %s177_s26  ;;  %p181_p6 = scmp.lt.u32.totalorder %s177_s26, %s324_s5 }
  0xda   :  { %p183_p7 = pnand %p181_p6, %p178_p5 }
  0xdc   :  { %186 = shalt.err (!%p183_p7)
}
  0xdd   :  { %155 = dma.vmem_to_hbm [thread:$0]  %s153_s22, 16, %s324_s5, [#allocation3]  }
  0xde   :  { %187 = dma.done.wait [#allocation3], 16  }
  0xdf   :  { %188 = vsyncadd [#allocation3], 4294967280 }
  0xe0   :  { %159 = vsyncpa [#allocation3], 1 }

</bundles_post_ra>
